<compile_context>
chip_gen: v7x
topology: tpu7x:2x2x1
jax: 0.10.0
libtpu: 0.0.40
codegen_flags: <defaults>
</compile_context>

<pallas_src>
import functools

import jax
import jax.numpy as jnp
from jax.experimental import pallas as pl
from jax.experimental.pallas import tpu as pltpu


def _make_decoder_kernel(T, B, H):
    def kernel(c_ref, wih_ref, whh_ref, b_ref, wlin_ref, blin_ref,
               out_ref, h_all_sc):
        # Loop-invariant input projection (same C every step): (B,H)@(H,4H)+bias.
        x_proj = jnp.dot(c_ref[...], wih_ref[...],
                         preferred_element_type=jnp.float32) + b_ref[...]
        whh = whh_ref[...]

        h = jnp.zeros((B, H), jnp.float32)
        c = jnp.zeros((B, H), jnp.float32)

        # Fully unrolled recurrence (T is static; equivalent to
        # lax.fori_loop(0, T, ..., unroll=True) but with static store offsets).
        for s in range(T):
            gates = x_proj + jnp.dot(h, whh,
                                     preferred_element_type=jnp.float32)
            # Vreg-wide activations on the full (B, 4H) tensor, then slice
            # the i/f/g/o gates (PyTorch gate order).
            sig = jax.nn.sigmoid(gates)
            th = jnp.tanh(gates)
            i_g = sig[:, 0 * H:1 * H]
            f_g = sig[:, 1 * H:2 * H]
            g_g = th[:, 2 * H:3 * H]
            o_g = sig[:, 3 * H:4 * H]
            c = f_g * c + i_g * g_g
            h = o_g * jnp.tanh(c)
            h_all_sc[s * B:(s + 1) * B, :] = h

        # One batched output projection for all T steps + a single store.
        y = jnp.dot(h_all_sc[...], wlin_ref[...],
                    preferred_element_type=jnp.float32) + blin_ref[...]
        out_ref[...] = y.astype(out_ref.dtype)

    return kernel


def regular_decoder_forward(C, t, mask, params, max_seq_len):
    """Pallas implementation of RegularDecoder.forward. `t`, `mask` unused."""
    del t, mask  # unused by the PyTorch forward as well
    B, H = C.shape
    O = params["w_lin"].shape[0]
    T = int(max_seq_len)

    # Pre-transpose weights once (layout plumbing, not per-step compute).
    wih_t = jnp.asarray(params["w_ih"].T, jnp.float32)              # (H, 4H)
    whh_t = jnp.asarray(params["w_hh"].T, jnp.float32)              # (H, 4H)
    b = jnp.asarray((params["b_ih"] + params["b_hh"]).reshape(1, 4 * H),
                    jnp.float32)                                     # (1, 4H)
    wlin_t = jnp.asarray(params["w_lin"].T, jnp.float32)            # (H, O)
    blin = jnp.asarray(params["b_lin"].reshape(1, O), jnp.float32)  # (1, O)

    vmem = pl.BlockSpec(memory_space=pltpu.MemorySpace.VMEM)

    # Single kernel invocation (no grid): the recurrence is inherently serial
    # over time, and all operands (~34 KB of weights + states) fit trivially in
    # VMEM on v5e/v6e/v7x.  If B ever grows, add a leading "parallel" batch
    # grid axis to shard rows across v7x's two TensorCores, and cast matmul
    # operands to bf16 (keep f32 accumulation) once H is large enough to
    # occupy the MXU.
    out_flat = pl.pallas_call(
        _make_decoder_kernel(T, B, H),
        out_shape=jax.ShapeDtypeStruct((T * B, O), jnp.float32),
        in_specs=[vmem] * 6,
        out_specs=vmem,
        scratch_shapes=[pltpu.VMEM((T * B, H), jnp.float32)],
    )(jnp.asarray(C, jnp.float32), wih_t, whh_t, b, wlin_t, blin)

    # (T*B, O) -> (T, B, O) is a free row-major metadata reshape; it matches
    # torch.cat of per-step (1, B, O) outputs along dim 0.
    return out_flat.reshape(T, B, O)


def reference_forward(C, params, max_seq_len):
    """Pure-JAX reference matching torch.nn.LSTM / nn.Linear semantics."""
    H = C.shape[1]
    h = jnp.zeros_like(C)
    c = jnp.zeros_like(C)
    outs = []
    for _ in range(max_seq_len):
        gates = (C @ params["w_ih"].T + params["b_ih"]
                 + h @ params["w_hh"].T + params["b_hh"])
        i = jax.nn.sigmoid(gates[:, 0 * H:1 * H])
        f = jax.nn.sigmoid(gates[:, 1 * H:2 * H])
        g = jnp.tanh(gates[:, 2 * H:3 * H])
        o = jax.nn.sigmoid(gates[:, 3 * H:4 * H])
        c = f * c + i * g
        h = o * jnp.tanh(c)
        outs.append(h @ params["w_lin"].T + params["b_lin"])
    return jnp.stack(outs, axis=0)


def init_params(key, hidden_dim, output_dim):
    """Deterministic parameter init, shapes as in nn.LSTM / nn.Linear."""
    k = 1.0 / jnp.sqrt(hidden_dim)
    keys = jax.random.split(key, 6)
    u = lambda kk, shape, bound: jax.random.uniform(
        kk, shape, jnp.float32, -bound, bound)
    return {
        "w_ih": u(keys[0], (4 * hidden_dim, hidden_dim), k),
        "w_hh": u(keys[1], (4 * hidden_dim, hidden_dim), k),
        "b_ih": u(keys[2], (4 * hidden_dim,), k),
        "b_hh": u(keys[3], (4 * hidden_dim,), k),
        "w_lin": u(keys[4], (output_dim, hidden_dim), k),
        "b_lin": u(keys[5], (output_dim,), k),
    }


if __name__ == "__main__":
    B = 2            # batch
    H = 32           # hidden_dim
    O = 16           # output_dim
    T = 8            # max_seq_len

    key = jax.random.PRNGKey(0)
    k_c, k_p, k_t, k_m = jax.random.split(key, 4)
    C = jax.random.normal(k_c, (B, H), jnp.float32)
    t_in = jax.random.normal(k_t, (T, B), jnp.float32)       # unused (parity)
    mask = jnp.ones((T, B), jnp.float32)                      # unused (parity)
    params = init_params(k_p, H, O)

    fwd = jax.jit(functools.partial(regular_decoder_forward, max_seq_len=T))
    out = jax.block_until_ready(fwd(C, t_in, mask, params))

    ref = reference_forward(C, params, T)
    assert out.shape == (T, B, O), out.shape
    assert jnp.allclose(out, ref, atol=1e-5, rtol=1e-5), \
        float(jnp.max(jnp.abs(out - ref)))

    print("KERNEL_OK")
</pallas_src>

<mosaic_0001>
module attributes {stable_mosaic.version = 11 : i64} {
  func.func @kernel(%arg0: memref<2x32xf32, #tpu.memory_space<vmem>>, %arg1: memref<32x128xf32, #tpu.memory_space<vmem>>, %arg2: memref<32x128xf32, #tpu.memory_space<vmem>>, %arg3: memref<1x128xf32, #tpu.memory_space<vmem>>, %arg4: memref<32x16xf32, #tpu.memory_space<vmem>>, %arg5: memref<1x16xf32, #tpu.memory_space<vmem>>, %arg6: memref<16x16xf32, #tpu.memory_space<vmem>>, %arg7: memref<16x32xf32, #tpu.memory_space<vmem>>) attributes {dimension_semantics = [], scalar_prefetch = 0 : i64, scratch_operands = 1 : i64, tpu.core_type = #tpu.core_type<tc>} {
    %c0 = arith.constant 0 : index
    %c0_0 = arith.constant 0 : index
    %0 = vector.load %arg0[%c0, %c0_0] : memref<2x32xf32, #tpu.memory_space<vmem>>, vector<2x32xf32>
    %c0_1 = arith.constant 0 : index
    %c0_2 = arith.constant 0 : index
    %1 = vector.load %arg1[%c0_1, %c0_2] : memref<32x128xf32, #tpu.memory_space<vmem>>, vector<32x128xf32>
    %cst = arith.constant dense<0.000000e+00> : vector<2x128xf32>
    %2 = tpu.matmul %0, %1, %cst {dimension_numbers = #tpu.dot_dimension_numbers<[1], [0], [0], [1], [0, 0, 1, 1], [], []>} : vector<2x32xf32>, vector<32x128xf32>, vector<2x128xf32> -> vector<2x128xf32>
    %c0_3 = arith.constant 0 : index
    %c0_4 = arith.constant 0 : index
    %3 = vector.load %arg3[%c0_3, %c0_4] : memref<1x128xf32, #tpu.memory_space<vmem>>, vector<1x128xf32>
    %4 = vector.broadcast %3 : vector<1x128xf32> to vector<2x128xf32>
    %5 = arith.addf %2, %4 : vector<2x128xf32>
    %c0_5 = arith.constant 0 : index
    %c0_6 = arith.constant 0 : index
    %6 = vector.load %arg2[%c0_5, %c0_6] : memref<32x128xf32, #tpu.memory_space<vmem>>, vector<32x128xf32>
    %cst_7 = arith.constant 0.000000e+00 : f32
    %7 = vector.broadcast %cst_7 : f32 to vector<2x32xf32>
    %cst_8 = arith.constant 0.000000e+00 : f32
    %8 = vector.broadcast %cst_8 : f32 to vector<2x32xf32>
    %cst_9 = arith.constant dense<0.000000e+00> : vector<2x128xf32>
    %9 = tpu.matmul %7, %6, %cst_9 {dimension_numbers = #tpu.dot_dimension_numbers<[1], [0], [0], [1], [0, 0, 1, 1], [], []>} : vector<2x32xf32>, vector<32x128xf32>, vector<2x128xf32> -> vector<2x128xf32>
    %10 = arith.addf %5, %9 : vector<2x128xf32>
    %11 = arith.negf %10 : vector<2x128xf32>
    %12 = math.exp %11 : vector<2x128xf32>
    %cst_10 = arith.constant 1.000000e+00 : f32
    %13 = vector.broadcast %cst_10 : f32 to vector<2x128xf32>
    %14 = arith.addf %13, %12 : vector<2x128xf32>
    %15 = arith.divf %13, %14 : vector<2x128xf32>
    %16 = math.tanh %10 : vector<2x128xf32>
    %17 = vector.extract_strided_slice %15 {offsets = [0, 0], sizes = [2, 32], strides = [1, 1]} : vector<2x128xf32> to vector<2x32xf32>
    %18 = vector.extract_strided_slice %15 {offsets = [0, 32], sizes = [2, 32], strides = [1, 1]} : vector<2x128xf32> to vector<2x32xf32>
    %19 = vector.extract_strided_slice %16 {offsets = [0, 64], sizes = [2, 32], strides = [1, 1]} : vector<2x128xf32> to vector<2x32xf32>
    %20 = vector.extract_strided_slice %15 {offsets = [0, 96], sizes = [2, 32], strides = [1, 1]} : vector<2x128xf32> to vector<2x32xf32>
    %21 = arith.mulf %18, %8 : vector<2x32xf32>
    %22 = arith.mulf %17, %19 : vector<2x32xf32>
    %23 = arith.addf %21, %22 : vector<2x32xf32>
    %24 = math.tanh %23 : vector<2x32xf32>
    %25 = arith.mulf %20, %24 : vector<2x32xf32>
    %c0_11 = arith.constant 0 : index
    %c0_12 = arith.constant 0 : index
    %26 = vector.load %arg7[%c0_11, %c0_12] : memref<16x32xf32, #tpu.memory_space<vmem>>, vector<2x32xf32>
    tpu.vector_store %arg7[%c0_11, %c0_12], %25 {strides = array<i32>} : memref<16x32xf32, #tpu.memory_space<vmem>>, vector<2x32xf32>,
    %cst_13 = arith.constant dense<0.000000e+00> : vector<2x128xf32>
    %27 = tpu.matmul %25, %6, %cst_13 {dimension_numbers = #tpu.dot_dimension_numbers<[1], [0], [0], [1], [0, 0, 1, 1], [], []>} : vector<2x32xf32>, vector<32x128xf32>, vector<2x128xf32> -> vector<2x128xf32>
    %28 = arith.addf %5, %27 : vector<2x128xf32>
    %29 = arith.negf %28 : vector<2x128xf32>
    %30 = math.exp %29 : vector<2x128xf32>
    %cst_14 = arith.constant 1.000000e+00 : f32
    %31 = vector.broadcast %cst_14 : f32 to vector<2x128xf32>
    %32 = arith.addf %31, %30 : vector<2x128xf32>
    %33 = arith.divf %31, %32 : vector<2x128xf32>
    %34 = math.tanh %28 : vector<2x128xf32>
    %35 = vector.extract_strided_slice %33 {offsets = [0, 0], sizes = [2, 32], strides = [1, 1]} : vector<2x128xf32> to vector<2x32xf32>
    %36 = vector.extract_strided_slice %33 {offsets = [0, 32], sizes = [2, 32], strides = [1, 1]} : vector<2x128xf32> to vector<2x32xf32>
    %37 = vector.extract_strided_slice %34 {offsets = [0, 64], sizes = [2, 32], strides = [1, 1]} : vector<2x128xf32> to vector<2x32xf32>
    %38 = vector.extract_strided_slice %33 {offsets = [0, 96], sizes = [2, 32], strides = [1, 1]} : vector<2x128xf32> to vector<2x32xf32>
    %39 = arith.mulf %36, %23 : vector<2x32xf32>
    %40 = arith.mulf %35, %37 : vector<2x32xf32>
    %41 = arith.addf %39, %40 : vector<2x32xf32>
    %42 = math.tanh %41 : vector<2x32xf32>
    %43 = arith.mulf %38, %42 : vector<2x32xf32>
    %c2 = arith.constant 2 : index
    %c0_15 = arith.constant 0 : index
    %44 = vector.load %arg7[%c2, %c0_15] : memref<16x32xf32, #tpu.memory_space<vmem>>, vector<2x32xf32>
    tpu.vector_store %arg7[%c2, %c0_15], %43 {strides = array<i32>} : memref<16x32xf32, #tpu.memory_space<vmem>>, vector<2x32xf32>,
    %cst_16 = arith.constant dense<0.000000e+00> : vector<2x128xf32>
    %45 = tpu.matmul %43, %6, %cst_16 {dimension_numbers = #tpu.dot_dimension_numbers<[1], [0], [0], [1], [0, 0, 1, 1], [], []>} : vector<2x32xf32>, vector<32x128xf32>, vector<2x128xf32> -> vector<2x128xf32>
    %46 = arith.addf %5, %45 : vector<2x128xf32>
    %47 = arith.negf %46 : vector<2x128xf32>
    %48 = math.exp %47 : vector<2x128xf32>
    %cst_17 = arith.constant 1.000000e+00 : f32
    %49 = vector.broadcast %cst_17 : f32 to vector<2x128xf32>
    %50 = arith.addf %49, %48 : vector<2x128xf32>
    %51 = arith.divf %49, %50 : vector<2x128xf32>
    %52 = math.tanh %46 : vector<2x128xf32>
    %53 = vector.extract_strided_slice %51 {offsets = [0, 0], sizes = [2, 32], strides = [1, 1]} : vector<2x128xf32> to vector<2x32xf32>
    %54 = vector.extract_strided_slice %51 {offsets = [0, 32], sizes = [2, 32], strides = [1, 1]} : vector<2x128xf32> to vector<2x32xf32>
    %55 = vector.extract_strided_slice %52 {offsets = [0, 64], sizes = [2, 32], strides = [1, 1]} : vector<2x128xf32> to vector<2x32xf32>
    %56 = vector.extract_strided_slice %51 {offsets = [0, 96], sizes = [2, 32], strides = [1, 1]} : vector<2x128xf32> to vector<2x32xf32>
    %57 = arith.mulf %54, %41 : vector<2x32xf32>
    %58 = arith.mulf %53, %55 : vector<2x32xf32>
    %59 = arith.addf %57, %58 : vector<2x32xf32>
    %60 = math.tanh %59 : vector<2x32xf32>
    %61 = arith.mulf %56, %60 : vector<2x32xf32>
    %c4 = arith.constant 4 : index
    %c0_18 = arith.constant 0 : index
    %62 = vector.load %arg7[%c4, %c0_18] : memref<16x32xf32, #tpu.memory_space<vmem>>, vector<2x32xf32>
    tpu.vector_store %arg7[%c4, %c0_18], %61 {strides = array<i32>} : memref<16x32xf32, #tpu.memory_space<vmem>>, vector<2x32xf32>,
    %cst_19 = arith.constant dense<0.000000e+00> : vector<2x128xf32>
    %63 = tpu.matmul %61, %6, %cst_19 {dimension_numbers = #tpu.dot_dimension_numbers<[1], [0], [0], [1], [0, 0, 1, 1], [], []>} : vector<2x32xf32>, vector<32x128xf32>, vector<2x128xf32> -> vector<2x128xf32>
    %64 = arith.addf %5, %63 : vector<2x128xf32>
    %65 = arith.negf %64 : vector<2x128xf32>
    %66 = math.exp %65 : vector<2x128xf32>
    %cst_20 = arith.constant 1.000000e+00 : f32
    %67 = vector.broadcast %cst_20 : f32 to vector<2x128xf32>
    %68 = arith.addf %67, %66 : vector<2x128xf32>
    %69 = arith.divf %67, %68 : vector<2x128xf32>
    %70 = math.tanh %64 : vector<2x128xf32>
    %71 = vector.extract_strided_slice %69 {offsets = [0, 0], sizes = [2, 32], strides = [1, 1]} : vector<2x128xf32> to vector<2x32xf32>
    %72 = vector.extract_strided_slice %69 {offsets = [0, 32], sizes = [2, 32], strides = [1, 1]} : vector<2x128xf32> to vector<2x32xf32>
    %73 = vector.extract_strided_slice %70 {offsets = [0, 64], sizes = [2, 32], strides = [1, 1]} : vector<2x128xf32> to vector<2x32xf32>
    %74 = vector.extract_strided_slice %69 {offsets = [0, 96], sizes = [2, 32], strides = [1, 1]} : vector<2x128xf32> to vector<2x32xf32>
    %75 = arith.mulf %72, %59 : vector<2x32xf32>
    %76 = arith.mulf %71, %73 : vector<2x32xf32>
    %77 = arith.addf %75, %76 : vector<2x32xf32>
    %78 = math.tanh %77 : vector<2x32xf32>
    %79 = arith.mulf %74, %78 : vector<2x32xf32>
    %c6 = arith.constant 6 : index
    %c0_21 = arith.constant 0 : index
    %80 = vector.load %arg7[%c6, %c0_21] : memref<16x32xf32, #tpu.memory_space<vmem>>, vector<2x32xf32>
    tpu.vector_store %arg7[%c6, %c0_21], %79 {strides = array<i32>} : memref<16x32xf32, #tpu.memory_space<vmem>>, vector<2x32xf32>,
    %cst_22 = arith.constant dense<0.000000e+00> : vector<2x128xf32>
    %81 = tpu.matmul %79, %6, %cst_22 {dimension_numbers = #tpu.dot_dimension_numbers<[1], [0], [0], [1], [0, 0, 1, 1], [], []>} : vector<2x32xf32>, vector<32x128xf32>, vector<2x128xf32> -> vector<2x128xf32>
    %82 = arith.addf %5, %81 : vector<2x128xf32>
    %83 = arith.negf %82 : vector<2x128xf32>
    %84 = math.exp %83 : vector<2x128xf32>
    %cst_23 = arith.constant 1.000000e+00 : f32
    %85 = vector.broadcast %cst_23 : f32 to vector<2x128xf32>
    %86 = arith.addf %85, %84 : vector<2x128xf32>
    %87 = arith.divf %85, %86 : vector<2x128xf32>
    %88 = math.tanh %82 : vector<2x128xf32>
    %89 = vector.extract_strided_slice %87 {offsets = [0, 0], sizes = [2, 32], strides = [1, 1]} : vector<2x128xf32> to vector<2x32xf32>
    %90 = vector.extract_strided_slice %87 {offsets = [0, 32], sizes = [2, 32], strides = [1, 1]} : vector<2x128xf32> to vector<2x32xf32>
    %91 = vector.extract_strided_slice %88 {offsets = [0, 64], sizes = [2, 32], strides = [1, 1]} : vector<2x128xf32> to vector<2x32xf32>
    %92 = vector.extract_strided_slice %87 {offsets = [0, 96], sizes = [2, 32], strides = [1, 1]} : vector<2x128xf32> to vector<2x32xf32>
    %93 = arith.mulf %90, %77 : vector<2x32xf32>
    %94 = arith.mulf %89, %91 : vector<2x32xf32>
    %95 = arith.addf %93, %94 : vector<2x32xf32>
    %96 = math.tanh %95 : vector<2x32xf32>
    %97 = arith.mulf %92, %96 : vector<2x32xf32>
    %c8 = arith.constant 8 : index
    %c0_24 = arith.constant 0 : index
    %98 = vector.load %arg7[%c8, %c0_24] : memref<16x32xf32, #tpu.memory_space<vmem>>, vector<2x32xf32>
    tpu.vector_store %arg7[%c8, %c0_24], %97 {strides = array<i32>} : memref<16x32xf32, #tpu.memory_space<vmem>>, vector<2x32xf32>,
    %cst_25 = arith.constant dense<0.000000e+00> : vector<2x128xf32>
    %99 = tpu.matmul %97, %6, %cst_25 {dimension_numbers = #tpu.dot_dimension_numbers<[1], [0], [0], [1], [0, 0, 1, 1], [], []>} : vector<2x32xf32>, vector<32x128xf32>, vector<2x128xf32> -> vector<2x128xf32>
    %100 = arith.addf %5, %99 : vector<2x128xf32>
    %101 = arith.negf %100 : vector<2x128xf32>
    %102 = math.exp %101 : vector<2x128xf32>
    %cst_26 = arith.constant 1.000000e+00 : f32
    %103 = vector.broadcast %cst_26 : f32 to vector<2x128xf32>
    %104 = arith.addf %103, %102 : vector<2x128xf32>
    %105 = arith.divf %103, %104 : vector<2x128xf32>
    %106 = math.tanh %100 : vector<2x128xf32>
    %107 = vector.extract_strided_slice %105 {offsets = [0, 0], sizes = [2, 32], strides = [1, 1]} : vector<2x128xf32> to vector<2x32xf32>
    %108 = vector.extract_strided_slice %105 {offsets = [0, 32], sizes = [2, 32], strides = [1, 1]} : vector<2x128xf32> to vector<2x32xf32>
    %109 = vector.extract_strided_slice %106 {offsets = [0, 64], sizes = [2, 32], strides = [1, 1]} : vector<2x128xf32> to vector<2x32xf32>
    %110 = vector.extract_strided_slice %105 {offsets = [0, 96], sizes = [2, 32], strides = [1, 1]} : vector<2x128xf32> to vector<2x32xf32>
    %111 = arith.mulf %108, %95 : vector<2x32xf32>
    %112 = arith.mulf %107, %109 : vector<2x32xf32>
    %113 = arith.addf %111, %112 : vector<2x32xf32>
    %114 = math.tanh %113 : vector<2x32xf32>
    %115 = arith.mulf %110, %114 : vector<2x32xf32>
    %c10 = arith.constant 10 : index
    %c0_27 = arith.constant 0 : index
    %116 = vector.load %arg7[%c10, %c0_27] : memref<16x32xf32, #tpu.memory_space<vmem>>, vector<2x32xf32>
    tpu.vector_store %arg7[%c10, %c0_27], %115 {strides = array<i32>} : memref<16x32xf32, #tpu.memory_space<vmem>>, vector<2x32xf32>,
    %cst_28 = arith.constant dense<0.000000e+00> : vector<2x128xf32>
    %117 = tpu.matmul %115, %6, %cst_28 {dimension_numbers = #tpu.dot_dimension_numbers<[1], [0], [0], [1], [0, 0, 1, 1], [], []>} : vector<2x32xf32>, vector<32x128xf32>, vector<2x128xf32> -> vector<2x128xf32>
    %118 = arith.addf %5, %117 : vector<2x128xf32>
    %119 = arith.negf %118 : vector<2x128xf32>
    %120 = math.exp %119 : vector<2x128xf32>
    %cst_29 = arith.constant 1.000000e+00 : f32
    %121 = vector.broadcast %cst_29 : f32 to vector<2x128xf32>
    %122 = arith.addf %121, %120 : vector<2x128xf32>
    %123 = arith.divf %121, %122 : vector<2x128xf32>
    %124 = math.tanh %118 : vector<2x128xf32>
    %125 = vector.extract_strided_slice %123 {offsets = [0, 0], sizes = [2, 32], strides = [1, 1]} : vector<2x128xf32> to vector<2x32xf32>
    %126 = vector.extract_strided_slice %123 {offsets = [0, 32], sizes = [2, 32], strides = [1, 1]} : vector<2x128xf32> to vector<2x32xf32>
    %127 = vector.extract_strided_slice %124 {offsets = [0, 64], sizes = [2, 32], strides = [1, 1]} : vector<2x128xf32> to vector<2x32xf32>
    %128 = vector.extract_strided_slice %123 {offsets = [0, 96], sizes = [2, 32], strides = [1, 1]} : vector<2x128xf32> to vector<2x32xf32>
    %129 = arith.mulf %126, %113 : vector<2x32xf32>
    %130 = arith.mulf %125, %127 : vector<2x32xf32>
    %131 = arith.addf %129, %130 : vector<2x32xf32>
    %132 = math.tanh %131 : vector<2x32xf32>
    %133 = arith.mulf %128, %132 : vector<2x32xf32>
    %c12 = arith.constant 12 : index
    %c0_30 = arith.constant 0 : index
    %134 = vector.load %arg7[%c12, %c0_30] : memref<16x32xf32, #tpu.memory_space<vmem>>, vector<2x32xf32>
    tpu.vector_store %arg7[%c12, %c0_30], %133 {strides = array<i32>} : memref<16x32xf32, #tpu.memory_space<vmem>>, vector<2x32xf32>,
    %cst_31 = arith.constant dense<0.000000e+00> : vector<2x128xf32>
    %135 = tpu.matmul %133, %6, %cst_31 {dimension_numbers = #tpu.dot_dimension_numbers<[1], [0], [0], [1], [0, 0, 1, 1], [], []>} : vector<2x32xf32>, vector<32x128xf32>, vector<2x128xf32> -> vector<2x128xf32>
    %136 = arith.addf %5, %135 : vector<2x128xf32>
    %137 = arith.negf %136 : vector<2x128xf32>
    %138 = math.exp %137 : vector<2x128xf32>
    %cst_32 = arith.constant 1.000000e+00 : f32
    %139 = vector.broadcast %cst_32 : f32 to vector<2x128xf32>
    %140 = arith.addf %139, %138 : vector<2x128xf32>
    %141 = arith.divf %139, %140 : vector<2x128xf32>
    %142 = math.tanh %136 : vector<2x128xf32>
    %143 = vector.extract_strided_slice %141 {offsets = [0, 0], sizes = [2, 32], strides = [1, 1]} : vector<2x128xf32> to vector<2x32xf32>
    %144 = vector.extract_strided_slice %141 {offsets = [0, 32], sizes = [2, 32], strides = [1, 1]} : vector<2x128xf32> to vector<2x32xf32>
    %145 = vector.extract_strided_slice %142 {offsets = [0, 64], sizes = [2, 32], strides = [1, 1]} : vector<2x128xf32> to vector<2x32xf32>
    %146 = vector.extract_strided_slice %141 {offsets = [0, 96], sizes = [2, 32], strides = [1, 1]} : vector<2x128xf32> to vector<2x32xf32>
    %147 = arith.mulf %144, %131 : vector<2x32xf32>
    %148 = arith.mulf %143, %145 : vector<2x32xf32>
    %149 = arith.addf %147, %148 : vector<2x32xf32>
    %150 = math.tanh %149 : vector<2x32xf32>
    %151 = arith.mulf %146, %150 : vector<2x32xf32>
    %c14 = arith.constant 14 : index
    %c0_33 = arith.constant 0 : index
    %152 = vector.load %arg7[%c14, %c0_33] : memref<16x32xf32, #tpu.memory_space<vmem>>, vector<2x32xf32>
    tpu.vector_store %arg7[%c14, %c0_33], %151 {strides = array<i32>} : memref<16x32xf32, #tpu.memory_space<vmem>>, vector<2x32xf32>,
    %c0_34 = arith.constant 0 : index
    %c0_35 = arith.constant 0 : index
    %153 = vector.load %arg7[%c0_34, %c0_35] : memref<16x32xf32, #tpu.memory_space<vmem>>, vector<16x32xf32>
    %c0_36 = arith.constant 0 : index
    %c0_37 = arith.constant 0 : index
    %154 = vector.load %arg4[%c0_36, %c0_37] : memref<32x16xf32, #tpu.memory_space<vmem>>, vector<32x16xf32>
    %cst_38 = arith.constant dense<0.000000e+00> : vector<16x16xf32>
    %155 = tpu.matmul %153, %154, %cst_38 {dimension_numbers = #tpu.dot_dimension_numbers<[1], [0], [0], [1], [0, 0, 1, 1], [], []>} : vector<16x32xf32>, vector<32x16xf32>, vector<16x16xf32> -> vector<16x16xf32>
    %c0_39 = arith.constant 0 : index
    %c0_40 = arith.constant 0 : index
    %156 = vector.load %arg5[%c0_39, %c0_40] : memref<1x16xf32, #tpu.memory_space<vmem>>, vector<1x16xf32>
    %157 = vector.broadcast %156 : vector<1x16xf32> to vector<16x16xf32>
    %158 = arith.addf %155, %157 : vector<16x16xf32>
    %c0_41 = arith.constant 0 : index
    %c0_42 = arith.constant 0 : index
    %159 = vector.load %arg6[%c0_41, %c0_42] : memref<16x16xf32, #tpu.memory_space<vmem>>, vector<16x16xf32>
    tpu.vector_store %arg6[%c0_41, %c0_42], %158 {strides = array<i32>} : memref<16x16xf32, #tpu.memory_space<vmem>>, vector<16x16xf32>,
    return
  }
}

</mosaic_0001>

<bundles_post_ra>
// kernel: regular_decoder_forward.1
= control target key start
LH: loop header
LB: loop body
LE: loop exit
PB: predicated region body
PF: predicated region fallthrough
CT: control target
= control target key end

     0   :  { %11 = vsyncpa [#allocation4], 0  ;;  %s1649_s0 = inlined_call_operand.vmem [shape: f32[2,32], index: 0, kind: input, shape index: {}]   ;;  %s1650_s1 = inlined_call_operand.vmem [shape: f32[32,128], index: 1, kind: input, shape index: {}]   ;;  %s1651_s2 = inlined_call_operand.vmem [shape: f32[32,128], index: 2, kind: input, shape index: {}]   ;;  %s1652_s3 = inlined_call_operand.vmem [shape: f32[1,128], index: 3, kind: input, shape index: {}]   ;;  %s1653_s4 = inlined_call_operand.vmem [shape: f32[32,16], index: 4, kind: input, shape index: {}]   ;;  %s1654_s5 = inlined_call_operand.hbm [shape: f32[1,16], index: 5, kind: input, shape index: {}]   ;;  %s1655_s6 = inlined_call_operand.hbm [shape: f32[16,16], index: 6, kind: output, shape index: {}]  }
   0x1   :  { %12 = vsyncpa [#allocation5], 0  ;;  %s1422_s21 = smov [#allocation3]   ;;  %s1374_s25 = scalar_lea.hbm %s1654_s5, 16 }
   0x2   :  { %s29_s22 = sshll.u32 %s1422_s21, 4  ;;  %p1375_p0 = scmp.ne.s32.totalorder %s1654_s5, %s1374_s25  ;;  %s30_s22 = int_to_ptr.vmem [resolvable:$true] %s29_s22 }
   0x3   :  { %p1378_p1 = scmp.lt.u32.totalorder %s1374_s25, %s1654_s5 }
   0x5   :  { %p1380_p2 = pnand %p1378_p1, %p1375_p0 }
   0x7   :  { %1383 = shalt.err (!%p1380_p2)
}
   0x8   :  { %s1384_s30 = scalar_lea.vmem %s30_s22, 16  ;;  %s1388_s7 = scalar_lea.vmem %s30_s22, 32 }
   0x9   :  { %p1385_p3 = scmp.ne.s32.totalorder %s30_s22, %s1384_s30  ;;  %p1389_p4 = scmp.lt.s32.totalorder %s30_s22, %s30_s22 }
   0xa   :  { %p1390_p5 = scmp.lt.s32.totalorder %s1388_s7, %s1384_s30 }
   0xc   :  { %p1391_p6 = por %p1390_p5, %p1389_p4 }
   0xe   :  { %p1392_p7 = pnand %p1391_p6, %p1385_p3 }
  0x10   :  { %1395 = shalt.err (!%p1392_p7)
}
  0x11   :  { %32 = dma.hbm_to_vmem [thread:$0]  %s1654_s5, 16, %s30_s22, [#allocation4]  }
  0x12   :  { %1418 = dma.done.wait [#allocation4], 16  }
  0x13   :  { %1419 = vsyncadd [#allocation4], 4294967280  ;;  %v1423_v0 = vmov 0.0|0.0   ;;  %vm1424_vm0 = vmmov 0   ;;  %v1425_v1 = vmov 0.0   ;;  %v37_v2 = vld [vmem:[%s1650_s1] sm:$0xff] }
  0x14   :  { %1239 = vmatprep.subr.bf16.mxu0 %v1423_v0  ;;  %1245 = vmatprep.subr.bf16.mxu1 %v1423_v0  ;;  %v38_v3 = vld [vmem:[%s1650_s1 + $0x8] sm:$0xff]  ;;  %v122_v4 = vld [vmem:[%s1651_s2] sm:$0xff]  ;;  %v39_v7 = vld [vmem:[%s1650_s1 + $0x10] sm:$0xff]  ;;  %vm48_vm1 = vcmask 261120   ;;  %s1426_s26 = smov 64   ;;  %vm228_vm2 = vcmask 254976  }
  0x15   :  { %1137 = vmatprep.mubr.msk.f32.mxu0 %vm1424_vm0, %v1425_v1  ;;  %1148 = vmatprep.mubr.msk.f32.mxu1 %vm1424_vm0, %v1425_v1  ;;  %v1240_v5 = vpack.c.bf16 %v38_v3, %v37_v2  ;;  %v123_v6 = vld [vmem:[%s1651_s2 + $0x8] sm:$0xff]  ;;  %v40_v8 = vld [vmem:[%s1650_s1 + $0x18] sm:$0xff]  ;;  %v124_v10 = vld [vmem:[%s1651_s2 + $0x10] sm:$0xff]  ;;  %s1428_s11 = smov [#allocation6]   ;;  %vm1038_vm3 = vcmask 130048  }
  0x16   :  { %v1502_v9 = vpack.c.bf16 %v123_v6, %v122_v4  ;;  %v125_v11 = vld [vmem:[%s1651_s2 + $0x18] sm:$0xff]  ;;  %v1243_v12 = vpack.c.bf16 %v40_v8, %v39_v7  ;;  %v36_v14 = vld [vmem:[%s1649_s0] sm:$0x3]  ;;  %s1046_s5 = sshll.u32 %s1428_s11, 4  ;;  %s1047_s5 = int_to_ptr.vmem [resolvable:$true] %s1046_s5 }
  0x17   :  { %1241 = vmatpush3.bf16.msra.mxu0 %v1240_v5  ;;  %v1512_v13 = vpack.c.bf16 %v125_v11, %v124_v10  ;;  %v1058_v15 = vld [vmem:[%s1652_s3] ss:$0 sm:$0xff]  ;;  %s1427_s3 = smov 32   ;;  %p1401_p9 = scmp.lt.s32.totalorder %s1047_s5, %s1047_s5 }
  0x18   :  { %1247 = vmatpush3.bf16.msra.mxu1 %v1502_v9  ;;  %1242 = vmatprep.subr.bf16.mxu0 %v1423_v0 }
  0x19   :  { %1248 = vmatprep.subr.bf16.mxu1 %v1423_v0 }
  0x1b   :  { %1244 = vmatpush3.bf16.msra.mxu0 %v1243_v12 }
  0x1c   :  { %1250 = vmatpush3.bf16.msra.mxu1 %v1512_v13  ;;  %1251 = vmatprep.subr.bf16.mxu0 %v1423_v0 }
  0x1d   :  { %1257 = vmatprep.subr.bf16.mxu1 %v1423_v0 }
  0x1e   :  { %1138 = vmatmul.mubr.msk.f32.vlgmr.msra.gmra.mrb[0].mxu0 %vm48_vm1, %v36_v14 }
  0x1f   :  { %1149 = vmatmul.mubr.f32.vlgmr.msra.gmra.mrb[0].mxu1 %v1425_v1  ;;  %1253 = vmatpush3.bf16.msra.mxu0 %v1502_v9 }
  0x20   :  { %1254 = vmatprep.subr.bf16.mxu0 %v1423_v0  ;;  %1159 = vmatprep.mubr.msk.f32.mxu0 %vm1424_vm0, %v1425_v1 }
  0x21   :  { %1259 = vmatpush3.bf16.msra.mxu1 %v1502_v9  ;;  %1170 = vmatprep.mubr.msk.f32.mxu1 %vm1424_vm0, %v1425_v1 }
  0x22   :  { %1260 = vmatprep.subr.bf16.mxu1 %v1423_v0 }
  0x23   :  { %1256 = vmatpush3.bf16.msra.mxu0 %v1512_v13 }
  0x24   :  { %1263 = vmatprep.subr.bf16.mxu0 %v1423_v0 }
  0x25   :  { %1262 = vmatpush3.bf16.msra.mxu1 %v1512_v13 }
  0x26   :  { %1269 = vmatprep.subr.bf16.mxu1 %v1423_v0 }
  0xf1   :  { %v118_v16 = vpop.f32.mrb[0].mxu0 }
  0xf2   :  { %v1538_v17 = vadd.f32 %v1058_v15, %v118_v16  ;;  %v1139_v18 = vpop.f32.mrb[1].mxu0  ;;  %v195_v19 = vpop.f32.mrb[0].mxu1 }
  0xf3   :  { %v1150_v20 = vpop.f32.mrb[1].mxu1 }
  0xf4   :  { %v199_v21 = vadd.f32 %v195_v19, %v1538_v17 }
  0xf6   :  { %1310 = vtanh.f32 %v199_v21  ;;  %v1060_v23 = vmul.f32 -1.442695, %v199_v21 }
  0xf8   :  { %1312 = vpow2.f32 %v1060_v23 }
 0x100   :  { %v1311_v22 = vpop.eup %1310 }
 0x101   :  { %209 = vrot.lane.b32.xlu0 %v1311_v22, %s1426_s26 }
 0x102   :  { %v1313_v24 = vpop.eup %1312 }
 0x103   :  { %v203_v25 = vadd.f32 1.0, %v1313_v24 }
 0x105   :  { %1314 = vrcp.f32 %v203_v25 }
 0x10f   :  { %v1315_v26 = vpop.eup %1314 }
 0x110   :  { %v207_v29 = vmul.f32 0.0, %v1315_v26 }
 0x173   :  { %v210_v27 = vpop.permute.xlu0 %209 }
 0x174   :  { %v212_v28 = vmul.f32 %v1315_v26, %v210_v27 }
 0x176   :  { %214 = vrot.lane.b32.xlu0 %v212_v28, %s1427_s3 }
 0x1e8   :  { %v215_v30 = vpop.permute.xlu0 %214 }
 0x1e9   :  { %v217_v31 = vadd.f32 %v215_v30, %v207_v29 }
 0x1eb   :  { %1316 = vtanh.f32 %v217_v31 }
 0x1f5   :  { %v1317_v32 = vpop.eup %1316 }
 0x1f6   :  { %220 = vrot.lane.b32.xlu1 %v1317_v32, %s1426_s26 }
 0x268   :  { %v221_v33 = vpop.permute.xlu1 %220 }
 0x269   :  { %v223_v34 = vmul.f32 %v1315_v26, %v221_v33 }
 0x26b   :  { %225 = vrot.lane.b32.xlu1 %v223_v34, %s1427_s3 }
 0x2dd   :  { %v226_v35 = vpop.permute.xlu1 %225 }
 0x2de   :  { %229 = vst.msk [vmem:[#allocation2] sm:$0x3] %vm228_vm2, %v226_v35  ;;  %1160 = vmatmul.mubr.msk.f32.vlgmr.msra.gmra.mrb[2].mxu0 %vm48_vm1, %v226_v35 }
 0x2df   :  { %1265 = vmatpush3.bf16.msra.mxu0 %v1502_v9  ;;  %1181 = vmatprep.mubr.msk.f32.mxu0 %vm1424_vm0, %v1425_v1 }
 0x2e0   :  { %1266 = vmatprep.subr.bf16.mxu0 %v1423_v0 }
 0x2e3   :  { %1268 = vmatpush3.bf16.msra.mxu0 %v1512_v13 }
 0x2e4   :  { %1275 = vmatprep.subr.bf16.mxu0 %v1423_v0 }
 0x3b1   :  { %v298_v36 = vpop.f32.mrb[2].mxu0 }
 0x3b2   :  { %v302_v37 = vadd.f32 %v298_v36, %v1538_v17  ;;  %v1161_v38 = vpop.f32.mrb[3].mxu0 }
 0x3b4   :  { %1318 = vtanh.f32 %v302_v37  ;;  %v1062_v40 = vmul.f32 -1.442695, %v302_v37 }
 0x3b6   :  { %1320 = vpow2.f32 %v1062_v40 }
 0x3be   :  { %v1319_v39 = vpop.eup %1318 }
 0x3bf   :  { %312 = vrot.lane.b32.xlu0 %v1319_v39, %s1426_s26 }
 0x3c0   :  { %v1321_v41 = vpop.eup %1320 }
 0x3c1   :  { %v306_v42 = vadd.f32 1.0, %v1321_v41 }
 0x3c3   :  { %1322 = vrcp.f32 %v306_v42 }
 0x3cd   :  { %v1323_v43 = vpop.eup %1322 }
 0x3ce   :  { %v310_v46 = vmul.f32 %v1323_v43, %v217_v31 }
 0x431   :  { %v313_v44 = vpop.permute.xlu0 %312 }
 0x432   :  { %v315_v45 = vmul.f32 %v1323_v43, %v313_v44 }
 0x434   :  { %317 = vrot.lane.b32.xlu1 %v315_v45, %s1427_s3 }
 0x4a6   :  { %v318_v47 = vpop.permute.xlu1 %317 }
 0x4a7   :  { %v320_v48 = vadd.f32 %v318_v47, %v310_v46 }
 0x4a9   :  { %1324 = vtanh.f32 %v320_v48 }
 0x4b3   :  { %v1325_v49 = vpop.eup %1324 }
 0x4b4   :  { %323 = vrot.lane.b32.xlu0 %v1325_v49, %s1426_s26 }
 0x526   :  { %v324_v50 = vpop.permute.xlu0 %323 }
 0x527   :  { %v326_v51 = vmul.f32 %v1323_v43, %v324_v50 }
 0x529   :  { %328 = vrot.lane.b32.xlu1 %v326_v51, %s1427_s3 }
 0x59b   :  { %v329_v52 = vpop.permute.xlu1 %328 }
 0x59c   :  { %331 = vst.msk [vmem:[#allocation2 + $0x2] sm:$0x3] %vm228_vm2, %v329_v52  ;;  %1171 = vmatmul.mubr.msk.f32.vlgmr.msra.gmra.mrb[2].mxu1 %vm48_vm1, %v329_v52 }
 0x59d   :  { %1271 = vmatpush3.bf16.msra.mxu1 %v1502_v9  ;;  %1192 = vmatprep.mubr.msk.f32.mxu1 %vm1424_vm0, %v1425_v1 }
 0x59e   :  { %1272 = vmatprep.subr.bf16.mxu1 %v1423_v0 }
 0x5a1   :  { %1274 = vmatpush3.bf16.msra.mxu1 %v1512_v13 }
 0x5a2   :  { %1281 = vmatprep.subr.bf16.mxu1 %v1423_v0 }
 0x66f   :  { %v400_v53 = vpop.f32.mrb[2].mxu1 }
 0x670   :  { %v404_v54 = vadd.f32 %v400_v53, %v1538_v17  ;;  %v1172_v55 = vpop.f32.mrb[3].mxu1 }
 0x672   :  { %1326 = vtanh.f32 %v404_v54  ;;  %v1064_v57 = vmul.f32 -1.442695, %v404_v54 }
 0x674   :  { %1328 = vpow2.f32 %v1064_v57 }
 0x67c   :  { %v1327_v56 = vpop.eup %1326 }
 0x67d   :  { %414 = vrot.lane.b32.xlu0 %v1327_v56, %s1426_s26 }
 0x67e   :  { %v1329_v58 = vpop.eup %1328 }
 0x67f   :  { %v408_v59 = vadd.f32 1.0, %v1329_v58 }
 0x681   :  { %1330 = vrcp.f32 %v408_v59 }
 0x68b   :  { %v1331_v60 = vpop.eup %1330 }
 0x68c   :  { %v412_v63 = vmul.f32 %v1331_v60, %v320_v48 }
 0x6ef   :  { %v415_v61 = vpop.permute.xlu0 %414 }
 0x6f0   :  { %v417_v62 = vmul.f32 %v1331_v60, %v415_v61 }
 0x6f2   :  { %419 = vrot.lane.b32.xlu1 %v417_v62, %s1427_s3 }
 0x764   :  { %v420_v2 = vpop.permute.xlu1 %419 }
 0x765   :  { %v422_v3 = vadd.f32 %v420_v2, %v412_v63 }
 0x767   :  { %1332 = vtanh.f32 %v422_v3 }
 0x771   :  { %v1333_v4 = vpop.eup %1332 }
 0x772   :  { %425 = vrot.lane.b32.xlu0 %v1333_v4, %s1426_s26 }
 0x7e4   :  { %v426_v5 = vpop.permute.xlu0 %425 }
 0x7e5   :  { %v428_v6 = vmul.f32 %v1331_v60, %v426_v5 }
 0x7e7   :  { %430 = vrot.lane.b32.xlu1 %v428_v6, %s1427_s3 }
 0x859   :  { %v431_v7 = vpop.permute.xlu1 %430 }
 0x85a   :  { %433 = vst.msk [vmem:[#allocation2 + $0x4] sm:$0x3] %vm228_vm2, %v431_v7  ;;  %1182 = vmatmul.mubr.msk.f32.vlgmr.msra.gmra.mrb[4].mxu0 %vm48_vm1, %v431_v7 }
 0x85b   :  { %1277 = vmatpush3.bf16.msra.mxu0 %v1502_v9  ;;  %1203 = vmatprep.mubr.msk.f32.mxu0 %vm1424_vm0, %v1425_v1 }
 0x85c   :  { %1278 = vmatprep.subr.bf16.mxu0 %v1423_v0 }
 0x85f   :  { %1280 = vmatpush3.bf16.msra.mxu0 %v1512_v13 }
 0x860   :  { %1287 = vmatprep.subr.bf16.mxu0 %v1423_v0 }
 0x92d   :  { %v502_v8 = vpop.f32.mrb[4].mxu0 }
 0x92e   :  { %v506_v10 = vadd.f32 %v502_v8, %v1538_v17  ;;  %v1183_v11 = vpop.f32.mrb[5].mxu0 }
 0x930   :  { %1334 = vtanh.f32 %v506_v10  ;;  %v1066_v14 = vmul.f32 -1.442695, %v506_v10 }
 0x932   :  { %1336 = vpow2.f32 %v1066_v14 }
 0x93a   :  { %v1335_v12 = vpop.eup %1334 }
 0x93b   :  { %516 = vrot.lane.b32.xlu0 %v1335_v12, %s1426_s26 }
 0x93c   :  { %v1337_v15 = vpop.eup %1336 }
 0x93d   :  { %v510_v16 = vadd.f32 1.0, %v1337_v15 }
 0x93f   :  { %1338 = vrcp.f32 %v510_v16 }
 0x949   :  { %v1339_v18 = vpop.eup %1338 }
 0x94a   :  { %v514_v21 = vmul.f32 %v1339_v18, %v422_v3 }
 0x9ad   :  { %v517_v19 = vpop.permute.xlu0 %516 }
 0x9ae   :  { %v519_v20 = vmul.f32 %v1339_v18, %v517_v19 }
 0x9b0   :  { %521 = vrot.lane.b32.xlu1 %v519_v20, %s1427_s3 }
 0xa22   :  { %v522_v22 = vpop.permute.xlu1 %521 }
 0xa23   :  { %v524_v23 = vadd.f32 %v522_v22, %v514_v21 }
 0xa25   :  { %1340 = vtanh.f32 %v524_v23 }
 0xa2f   :  { %v1341_v24 = vpop.eup %1340 }
 0xa30   :  { %527 = vrot.lane.b32.xlu0 %v1341_v24, %s1426_s26 }
 0xaa2   :  { %v528_v25 = vpop.permute.xlu0 %527 }
 0xaa3   :  { %v530_v26 = vmul.f32 %v1339_v18, %v528_v25 }
 0xaa5   :  { %532 = vrot.lane.b32.xlu1 %v530_v26, %s1427_s3 }
 0xb17   :  { %v533_v27 = vpop.permute.xlu1 %532 }
 0xb18   :  { %535 = vst.msk [vmem:[#allocation2 + $0x6] sm:$0x3] %vm228_vm2, %v533_v27  ;;  %1193 = vmatmul.mubr.msk.f32.vlgmr.msra.gmra.mrb[4].mxu1 %vm48_vm1, %v533_v27 }
 0xb19   :  { %1283 = vmatpush3.bf16.msra.mxu1 %v1502_v9  ;;  %1214 = vmatprep.mubr.msk.f32.mxu1 %vm1424_vm0, %v1425_v1 }
 0xb1a   :  { %1284 = vmatprep.subr.bf16.mxu1 %v1423_v0 }
 0xb1d   :  { %1286 = vmatpush3.bf16.msra.mxu1 %v1512_v13 }
 0xb1f   :  { %v944_v58 = vld [vmem:[#allocation2] sm:$0xff] }
 0xbeb   :  { %v604_v28 = vpop.f32.mrb[4].mxu1 }
 0xbec   :  { %v608_v29 = vadd.f32 %v604_v28, %v1538_v17  ;;  %v1194_v30 = vpop.f32.mrb[5].mxu1 }
 0xbed   :  { %v946_v30 = vld [vmem:[%s1653_s4] sm:$0xff] }
 0xbee   :  { %1342 = vtanh.f32 %v608_v29  ;;  %v1068_v32 = vmul.f32 -1.442695, %v608_v29 }
 0xbf0   :  { %1344 = vpow2.f32 %v1068_v32 }
 0xbf8   :  { %v1343_v31 = vpop.eup %1342 }
 0xbf9   :  { %618 = vrot.lane.b32.xlu0 %v1343_v31, %s1426_s26  ;;  %v947_v31 = vld [vmem:[%s1653_s4 + $0x8] sm:$0xff] }
 0xbfa   :  { %v1345_v33 = vpop.eup %1344  ;;  %v1293_v32 = vpack.c.bf16 %v947_v31, %v946_v30 }
 0xbfb   :  { %v612_v34 = vadd.f32 1.0, %v1345_v33  ;;  %v948_v33 = vld [vmem:[%s1653_s4 + $0x10] sm:$0xff] }
 0xbfc   :  { %1294 = vmatprep.subr.bf16.mxu1 %v1293_v32 }
 0xbfd   :  { %1346 = vrcp.f32 %v612_v34  ;;  %v949_v34 = vld [vmem:[%s1653_s4 + $0x18] sm:$0xff]  ;;  %s1396_s4 = scalar_lea.vmem %s1047_s5, 256 }
 0xbfe   :  { %p1397_p8 = scmp.ne.s32.totalorder %s1047_s5, %s1396_s4  ;;  %p1402_p10 = scmp.lt.s32.totalorder %s1396_s4, %s1396_s4 }
 0xc00   :  { %p1403_p11 = por %p1402_p10, %p1401_p9 }
 0xc02   :  { %p1404_p12 = pnand %p1403_p11, %p1397_p8 }
 0xc07   :  { %v1347_v35 = vpop.eup %1346 }
 0xc08   :  { %v616_v38 = vmul.f32 %v1347_v35, %v524_v23 }
 0xc6b   :  { %v619_v36 = vpop.permute.xlu0 %618 }
 0xc6c   :  { %v621_v37 = vmul.f32 %v1347_v35, %v619_v36 }
 0xc6e   :  { %623 = vrot.lane.b32.xlu1 %v621_v37, %s1427_s3 }
 0xce0   :  { %v624_v39 = vpop.permute.xlu1 %623 }
 0xce1   :  { %v626_v40 = vadd.f32 %v624_v39, %v616_v38 }
 0xce3   :  { %1348 = vtanh.f32 %v626_v40 }
 0xced   :  { %v1349_v41 = vpop.eup %1348 }
 0xcee   :  { %629 = vrot.lane.b32.xlu0 %v1349_v41, %s1426_s26 }
 0xd60   :  { %v630_v42 = vpop.permute.xlu0 %629 }
 0xd61   :  { %v632_v43 = vmul.f32 %v1347_v35, %v630_v42  ;;  %v1297_v35 = vpack.c.bf16 %v949_v34, %v948_v33 }
 0xd63   :  { %634 = vrot.lane.b32.xlu1 %v632_v43, %s1427_s3 }
 0xdd5   :  { %v635_v44 = vpop.permute.xlu1 %634 }
 0xdd6   :  { %637 = vst.msk [vmem:[#allocation2 + $0x8] sm:$0x3] %vm228_vm2, %v635_v44  ;;  %1204 = vmatmul.mubr.msk.f32.vlgmr.msra.gmra.mrb[6].mxu0 %vm48_vm1, %v635_v44 }
 0xdd7   :  { %1289 = vmatpush3.bf16.msra.mxu0 %v1502_v9  ;;  %1225 = vmatprep.mubr.msk.f32.mxu0 %vm1424_vm0, %v1425_v1 }
 0xdd8   :  { %1290 = vmatprep.subr.bf16.mxu0 %v1423_v0 }
 0xddb   :  { %1292 = vmatpush3.bf16.msra.mxu0 %v1512_v13 }
 0xea9   :  { %v706_v45 = vpop.f32.mrb[6].mxu0 }
 0xeaa   :  { %v710_v46 = vadd.f32 %v706_v45, %v1538_v17  ;;  %v1205_v47 = vpop.f32.mrb[7].mxu0 }
 0xeac   :  { %1350 = vtanh.f32 %v710_v46  ;;  %v1070_v49 = vmul.f32 -1.442695, %v710_v46 }
 0xeae   :  { %1352 = vpow2.f32 %v1070_v49 }
 0xeb6   :  { %v1351_v48 = vpop.eup %1350 }
 0xeb7   :  { %720 = vrot.lane.b32.xlu0 %v1351_v48, %s1426_s26 }
 0xeb8   :  { %v1353_v50 = vpop.eup %1352 }
 0xeb9   :  { %v714_v51 = vadd.f32 1.0, %v1353_v50 }
 0xebb   :  { %1354 = vrcp.f32 %v714_v51 }
 0xec5   :  { %v1355_v9 = vpop.eup %1354 }
 0xec6   :  { %v718_v0 = vmul.f32 %v1355_v9, %v626_v40  ;;  %v1075_v40 = vld [vmem:[#allocation3] ss:$0 sm:$0xff] }
 0xf29   :  { %v721_v52 = vpop.permute.xlu0 %720 }
 0xf2a   :  { %v723_v1 = vmul.f32 %v1355_v9, %v721_v52 }
 0xf2c   :  { %725 = vrot.lane.b32.xlu1 %v723_v1, %s1427_s3 }
 0xf9e   :  { %v726_v13 = vpop.permute.xlu1 %725 }
 0xf9f   :  { %v728_v53 = vadd.f32 %v726_v13, %v718_v0 }
 0xfa1   :  { %1356 = vtanh.f32 %v728_v53 }
 0xfab   :  { %v1357_v54 = vpop.eup %1356 }
 0xfac   :  { %731 = vrot.lane.b32.xlu0 %v1357_v54, %s1426_s26 }
0x101e   :  { %v732_v55 = vpop.permute.xlu0 %731 }
0x101f   :  { %v734_v56 = vmul.f32 %v1355_v9, %v732_v55 }
0x1021   :  { %736 = vrot.lane.b32.xlu1 %v734_v56, %s1427_s3 }
0x1093   :  { %v737_v57 = vpop.permute.xlu1 %736 }
0x1094   :  { %739 = vst.msk [vmem:[#allocation2 + $0xa] sm:$0x3] %vm228_vm2, %v737_v57  ;;  %1215 = vmatmul.mubr.msk.f32.vlgmr.msra.gmra.mrb[6].mxu1 %vm48_vm1, %v737_v57 }
0x1095   :  { %1236 = vmatprep.mubr.msk.f32.mxu1 %vm48_vm1, %v944_v58  ;;  %1296 = vmatpush3.bf16.msra.mxu1 %v1293_v32 }
0x1096   :  { %1298 = vmatprep.subr.bf16.mxu1 %v1297_v35 }
0x1099   :  { %1300 = vmatpush3.bf16.msra.mxu1 %v1297_v35 }
0x1167   :  { %v808_v59 = vpop.f32.mrb[6].mxu1 }
0x1168   :  { %v812_v60 = vadd.f32 %v808_v59, %v1538_v17  ;;  %v1216_v61 = vpop.f32.mrb[7].mxu1 }
0x116a   :  { %1358 = vtanh.f32 %v812_v60  ;;  %v1072_v63 = vmul.f32 -1.442695, %v812_v60 }
0x116c   :  { %1360 = vpow2.f32 %v1072_v63 }
0x1174   :  { %v1359_v62 = vpop.eup %1358 }
0x1175   :  { %822 = vrot.lane.b32.xlu0 %v1359_v62, %s1426_s26 }
0x1176   :  { %v1361_v2 = vpop.eup %1360 }
0x1177   :  { %v816_v3 = vadd.f32 1.0, %v1361_v2 }
0x1179   :  { %1362 = vrcp.f32 %v816_v3 }
0x1183   :  { %v1363_v4 = vpop.eup %1362 }
0x1184   :  { %v820_v7 = vmul.f32 %v1363_v4, %v728_v53 }
0x11e7   :  { %v823_v5 = vpop.permute.xlu0 %822 }
0x11e8   :  { %v825_v6 = vmul.f32 %v1363_v4, %v823_v5 }
0x11ea   :  { %827 = vrot.lane.b32.xlu1 %v825_v6, %s1427_s3 }
0x125c   :  { %v828_v8 = vpop.permute.xlu1 %827 }
0x125d   :  { %v830_v10 = vadd.f32 %v828_v8, %v820_v7 }
0x125f   :  { %1364 = vtanh.f32 %v830_v10 }
0x1269   :  { %v1365_v11 = vpop.eup %1364 }
0x126a   :  { %833 = vrot.lane.b32.xlu0 %v1365_v11, %s1426_s26 }
0x12dc   :  { %v834_v12 = vpop.permute.xlu0 %833 }
0x12dd   :  { %v836_v14 = vmul.f32 %v1363_v4, %v834_v12 }
0x12df   :  { %838 = vrot.lane.b32.xlu1 %v836_v14, %s1427_s3 }
0x1351   :  { %v839_v15 = vpop.permute.xlu1 %838 }
0x1352   :  { %841 = vst.msk [vmem:[#allocation2 + $0xc] sm:$0x3] %vm228_vm2, %v839_v15  ;;  %1226 = vmatmul.mubr.msk.f32.vlgmr.msra.gmra.mrb[8].mxu0 %vm48_vm1, %v839_v15 }
0x1425   :  { %v910_v16 = vpop.f32.mrb[8].mxu0 }
0x1426   :  { %v914_v18 = vadd.f32 %v910_v16, %v1538_v17  ;;  %v1227_v19 = vpop.f32.mrb[9].mxu0 }
0x1428   :  { %1366 = vtanh.f32 %v914_v18  ;;  %v1074_v21 = vmul.f32 -1.442695, %v914_v18 }
0x142a   :  { %1368 = vpow2.f32 %v1074_v21 }
0x1432   :  { %v1367_v20 = vpop.eup %1366 }
0x1433   :  { %924 = vrot.lane.b32.xlu0 %v1367_v20, %s1426_s26 }
0x1434   :  { %v1369_v22 = vpop.eup %1368 }
0x1435   :  { %v918_v23 = vadd.f32 1.0, %v1369_v22 }
0x1437   :  { %1370 = vrcp.f32 %v918_v23 }
0x1441   :  { %v1371_v24 = vpop.eup %1370 }
0x1442   :  { %v922_v27 = vmul.f32 %v1371_v24, %v830_v10 }
0x14a5   :  { %v925_v25 = vpop.permute.xlu0 %924 }
0x14a6   :  { %v927_v26 = vmul.f32 %v1371_v24, %v925_v25 }
0x14a8   :  { %929 = vrot.lane.b32.xlu1 %v927_v26, %s1427_s3 }
0x151a   :  { %v930_v28 = vpop.permute.xlu1 %929 }
0x151b   :  { %v932_v29 = vadd.f32 %v930_v28, %v922_v27 }
0x151d   :  { %1372 = vtanh.f32 %v932_v29 }
0x1527   :  { %v1373_v17 = vpop.eup %1372 }
0x1528   :  { %935 = vrot.lane.b32.xlu0 %v1373_v17, %s1426_s26 }
0x159a   :  { %v936_v36 = vpop.permute.xlu0 %935 }
0x159b   :  { %v938_v37 = vmul.f32 %v1371_v24, %v936_v36 }
0x159d   :  { %940 = vrot.lane.b32.xlu1 %v938_v37, %s1427_s3 }
0x160f   :  { %v941_v38 = vpop.permute.xlu1 %940 }
0x1610   :  { %943 = vst.msk [vmem:[#allocation2 + $0xe] sm:$0x3] %vm228_vm2, %v941_v38 }
0x1617   :  { %v945_v39 = vld [vmem:[#allocation2 + $0x8] sm:$0xff] }
0x1618   :  { %1237 = vmatmul.mubr.msk.f32.vlgmr.msra.gmra.mrb[8].mxu1 %vm48_vm1, %v945_v39 }
0x16eb   :  { %v1238_v41 = vpop.f32.mrb[8].mxu1 }
0x16ec   :  { %v1035_v42 = vadd.f32 %v1238_v41, %v1075_v40  ;;  %v1029_v43 = vpop.f32.mrb[9].mxu1 }
0x16ed   :  { %v1030_v44 = vadd.f32 %v1075_v40, %v1029_v43 }
0x16ee   :  { %1040 = vst.msk [vmem:[#allocation6 + $0x8] sm:$0xff] %vm1038_vm3, %v1035_v42 }
0x16ef   :  { %1039 = vst.msk [vmem:[#allocation6] sm:$0xff] %vm1038_vm3, %v1030_v44 }
0x16f0   :  { %1407 = shalt.err (!%p1404_p12)
}
0x16f1   :  { %s1408_s14 = scalar_lea.hbm %s1655_s6, 256 }
0x16f2   :  { %p1409_p13 = scmp.ne.s32.totalorder %s1655_s6, %s1408_s14  ;;  %p1412_p0 = scmp.lt.u32.totalorder %s1408_s14, %s1655_s6 }
0x16f4   :  { %p1414_p1 = pnand %p1412_p0, %p1409_p13 }
0x16f6   :  { %1417 = shalt.err (!%p1414_p1)
}
0x16f7   :  { %s1429_s19 = smov 128   ;;  %s1430_s20 = smov 8  }
0x16f8   :  { %1052 = dma.vmem_to_hbm [thread:$0]  %s1047_s5, 256, %s1655_s6, [#allocation5], %s1429_s19, %s1429_s19, %s1430_s20  }
0x16f9   :  { %1420 = dma.done.wait [#allocation5], 256  }
0x16fa   :  { %1421 = vsyncadd [#allocation5], 4294967040 }
0x16fb   :  { %1056 = vsyncpa [#allocation4], 1 }
0x16fc   :  { %1057 = vsyncpa [#allocation5], 1 }

</bundles_post_ra>
